<compile_context>
chip_gen: v6e
topology: v6e:2x2x1
jax: 0.10.0
libtpu: 0.0.40
codegen_flags: <defaults>
</compile_context>

<pallas_src>
import jax
import jax.numpy as jnp
from jax.experimental import pallas as pl
from jax.experimental.pallas import tpu as pltpu

_LANE = 128
_SUBLANE = 8


def _round_up(x, m):
    return ((x + m - 1) // m) * m


def _make_fused_mlp_kernel(n_layers):
    """Kernel args: (alpha_smem, x, w0, b0, ..., w_{L-1}, b_{L-1}, out)."""

    def kernel(alpha_ref, x_ref, *rest):
        o_ref = rest[-1]
        wb = rest[:-1]
        h = x_ref[...].astype(jnp.float32)
        for l in range(n_layers):
            # Weights stored bf16: upcast in vregs, accumulate f32 on the MXU.
            w = wb[2 * l][...].astype(jnp.float32)
            b = wb[2 * l + 1][...].astype(jnp.float32)
            y = jnp.dot(h, w, preferred_element_type=jnp.float32) + b
            if l < n_layers - 1:          # hidden layers get PReLU
                a = alpha_ref[l]          # scalar read from SMEM
                y = jnp.where(y >= 0.0, y, a * y)
            h = y
        o_ref[...] = h.astype(o_ref.dtype)

    return kernel


def init_dynamic_net_params(key, topology, weight_dtype=jnp.bfloat16):
    """Params mimicking nn.Linear init (uniform +/- 1/sqrt(in_d)) and PReLU
    default single shared slope 0.25. Weights stored pre-transposed
    (in_d, out_d) so the in-kernel matmul x @ W is lane-dense on outputs."""
    params = []
    n_layers = len(topology) - 1
    for l in range(n_layers):
        in_d, out_d = topology[l], topology[l + 1]
        key, kw, kb = jax.random.split(key, 3)
        bound = 1.0 / (in_d ** 0.5)
        w_t = jax.random.uniform(kw, (in_d, out_d), jnp.float32,
                                 -bound, bound).astype(weight_dtype)
        b = jax.random.uniform(kb, (out_d,), jnp.float32, -bound, bound)
        alpha = 0.25 if l < n_layers - 1 else None  # last layer: no activation
        params.append((w_t, b, alpha))
    return params


def prepare_dynamic_net(params, feature_align=_LANE):
    """Pad weights/biases ONCE and cache them (do NOT call per forward).
    feature_align=256 aligns N to the v6e MXU geometry if desired."""
    n_layers = len(params)
    padded_wb = []
    shapes = []
    alphas = []
    for (w_t, b, alpha) in params:
        i_d, o_d = w_t.shape
        ip = _round_up(i_d, feature_align)
        op = _round_up(o_d, feature_align)
        w_p = jnp.zeros((ip, op), w_t.dtype).at[:i_d, :o_d].set(w_t)
        b_p = jnp.zeros((1, op), jnp.float32).at[0, :o_d].set(b.astype(jnp.float32))
        padded_wb += [w_p, b_p]
        shapes.append((ip, op))
        if alpha is not None:
            alphas.append(float(alpha))

    num_prelu = max(n_layers - 1, 1)
    alpha_arr = jnp.zeros((num_prelu,), jnp.float32)
    if alphas:
        alpha_arr = alpha_arr.at[: len(alphas)].set(jnp.asarray(alphas, jnp.float32))

    return {
        "n_layers": n_layers,
        "padded_wb": [jax.device_put(a) for a in padded_wb],
        "alpha": jax.device_put(alpha_arr),
        "shapes": tuple(shapes),
        "in_d": params[0][0].shape[0],
        "out_d": params[-1][0].shape[1],
        "in_p": shapes[0][0],
        "out_p": shapes[-1][1],
    }


def dynamic_net_forward(prepared, x, *, block_batch=512, return_padded=False):
    """Fused forward using cached padded params from prepare_dynamic_net()."""
    n_layers = prepared["n_layers"]
    shapes = prepared["shapes"]
    in_d, out_d = prepared["in_d"], prepared["out_d"]
    in_p, out_p = prepared["in_p"], prepared["out_p"]
    batch = x.shape[0]

    # --- batch tiling ---------------------------------------------------------
    # Big tiles amortize the ~0.35us/step pipeline overhead; keep bm*width*4B
    # modest so intermediates don't spill.  If only one grid step would result
    # and the tile is splittable, halve it so >=2 steps exist (feeds both v7x
    # TensorCores under "parallel" semantics).
    bm = block_batch if batch >= block_batch else _round_up(batch, _SUBLANE)
    batch_p = _round_up(batch, bm)
    if batch_p // bm == 1 and bm > _SUBLANE:
        bm = _round_up(bm // 2, _SUBLANE)
        batch_p = _round_up(batch, bm)
    grid_steps = batch_p // bm

    x_p = jnp.pad(x.astype(jnp.float32),
                  ((0, batch_p - batch), (0, in_p - in_d)))

    # --- specs ----------------------------------------------------------------
    wb_specs = []
    for (ip, op) in shapes:
        # Weight-stationary across all batch steps -> single-buffered: the
        # default second buffer would be pure VMEM waste.
        wb_specs.append(pl.BlockSpec((ip, op), lambda i: (0, 0),
                                     pipeline_mode=pl.Buffered(1)))
        wb_specs.append(pl.BlockSpec((1, op), lambda i: (0, 0),
                                     pipeline_mode=pl.Buffered(1)))

    in_specs = (
        [pl.BlockSpec(memory_space=pltpu.MemorySpace.SMEM)]   # PReLU slopes
        + [pl.BlockSpec((bm, in_p), lambda i: (i, 0))]        # activations (streamed)
        + wb_specs
    )
    out_specs = pl.BlockSpec((bm, out_p), lambda i: (i, 0))

    # --- explicit VMEM budget + cost estimate ----------------------------------
    w_bytes = sum(int(a.size) * a.dtype.itemsize for a in prepared["padded_wb"])
    act_bytes = 2 * bm * in_p * 4 + 2 * bm * out_p * 4          # double-buffered tiles
    inter_bytes = 2 * bm * max(op for (_, op) in shapes) * 4    # layer intermediates
    vmem_budget = int(1.5 * (w_bytes + act_bytes + inter_bytes)) + (4 << 20)
    vmem_budget = min(max(vmem_budget, 8 << 20), 100 << 20)
    # TODO(synk): for topologies where a single padded weight blows the budget
    # (esp. v7x 64 MiB), add a K-tiled reduction axis instead of full residency.

    flops = 2 * grid_steps * bm * sum(ip * op for (ip, op) in shapes)
    bytes_accessed = w_bytes + batch_p * (in_p + out_p) * 4
    cost = pl.CostEstimate(flops=flops, transcendentals=0,
                           bytes_accessed=bytes_accessed)

    out = pl.pallas_call(
        _make_fused_mlp_kernel(n_layers),
        out_shape=jax.ShapeDtypeStruct((batch_p, out_p), jnp.float32),
        grid=(grid_steps,),
        in_specs=in_specs,
        out_specs=out_specs,
        compiler_params=pltpu.CompilerParams(
            dimension_semantics=("parallel",),
            vmem_limit_bytes=vmem_budget),
        cost_estimate=cost,
    )(prepared["alpha"], x_p, *prepared["padded_wb"])

    if return_padded:
        return out             # avoid the extra HBM copy for downstream consumers
    return out[:batch, :out_d]


def _reference_forward(params, x):
    # Pure-JAX reference (same bf16-stored weights, f32 compute).
    h = x.astype(jnp.float32)
    for (w_t, b, alpha) in params:
        y = h @ w_t.astype(jnp.float32) + b
        if alpha is not None:
            y = jnp.where(y >= 0.0, y, alpha * y)
        h = y
    return h


if __name__ == "__main__":
    topology = [16, 32, 32, 8]   # in_d, hidden, hidden, out_d
    batch = 8

    key = jax.random.PRNGKey(0)
    key, kx = jax.random.split(key)
    x = jax.random.normal(kx, (batch, topology[0]), jnp.float32)

    params = init_dynamic_net_params(key, topology)   # bf16 weights, f32 biases
    prepared = prepare_dynamic_net(params)            # pad ONCE, reuse every call

    out = dynamic_net_forward(prepared, x)
    out = jax.block_until_ready(out)

    ref = _reference_forward(params, x)
    assert out.shape == (batch, topology[-1])
    assert jnp.allclose(out, ref, atol=1e-2, rtol=1e-2)

    print("KERNEL_OK")
</pallas_src>

<mosaic_0001>
module attributes {stable_mosaic.version = 11 : i64} {
  func.func @kernel(%arg0: i32, %arg1: memref<2xf32, #tpu.memory_space<smem>>, %arg2: memref<8x128xf32, #tpu.memory_space<vmem>>, %arg3: memref<128x128xbf16, #tpu.memory_space<vmem>>, %arg4: memref<1x128xf32, #tpu.memory_space<vmem>>, %arg5: memref<128x128xbf16, #tpu.memory_space<vmem>>, %arg6: memref<1x128xf32, #tpu.memory_space<vmem>>, %arg7: memref<128x128xbf16, #tpu.memory_space<vmem>>, %arg8: memref<1x128xf32, #tpu.memory_space<vmem>>, %arg9: memref<8x128xf32, #tpu.memory_space<vmem>>) attributes {dimension_semantics = [#tpu.dimension_semantics<parallel>], iteration_bounds = array<i64: 1>, scalar_prefetch = 0 : i64, scratch_operands = 0 : i64, tpu.core_type = #tpu.core_type<tc>, window_params = [{transform_indices = @transform_0, window_bounds = array<i64: 2>}, {transform_indices = @transform_1, window_bounds = array<i64: 8, 128>}, {pipeline_mode = #tpu.pipeline_mode<synchronous>, transform_indices = @transform_2, window_bounds = array<i64: 128, 128>}, {pipeline_mode = #tpu.pipeline_mode<synchronous>, transform_indices = @transform_3, window_bounds = array<i64: 1, 128>}, {pipeline_mode = #tpu.pipeline_mode<synchronous>, transform_indices = @transform_4, window_bounds = array<i64: 128, 128>}, {pipeline_mode = #tpu.pipeline_mode<synchronous>, transform_indices = @transform_5, window_bounds = array<i64: 1, 128>}, {pipeline_mode = #tpu.pipeline_mode<synchronous>, transform_indices = @transform_6, window_bounds = array<i64: 128, 128>}, {pipeline_mode = #tpu.pipeline_mode<synchronous>, transform_indices = @transform_7, window_bounds = array<i64: 1, 128>}, {transform_indices = @transform_8, window_bounds = array<i64: 8, 128>}]} {
    %c0 = arith.constant 0 : index
    %c0_0 = arith.constant 0 : index
    %0 = vector.load %arg2[%c0, %c0_0] : memref<8x128xf32, #tpu.memory_space<vmem>>, vector<8x128xf32>
    %c0_1 = arith.constant 0 : index
    %c0_2 = arith.constant 0 : index
    %1 = vector.load %arg3[%c0_1, %c0_2] : memref<128x128xbf16, #tpu.memory_space<vmem>>, vector<128x128xbf16>
    %2 = arith.extf %1 : vector<128x128xbf16> to vector<128x128xf32>
    %c0_3 = arith.constant 0 : index
    %c0_4 = arith.constant 0 : index
    %3 = vector.load %arg4[%c0_3, %c0_4] : memref<1x128xf32, #tpu.memory_space<vmem>>, vector<1x128xf32>
    %cst = arith.constant dense<0.000000e+00> : vector<8x128xf32>
    %4 = tpu.matmul %0, %2, %cst {dimension_numbers = #tpu.dot_dimension_numbers<[1], [0], [0], [1], [0, 0, 1, 1], [], []>} : vector<8x128xf32>, vector<128x128xf32>, vector<8x128xf32> -> vector<8x128xf32>
    %5 = vector.broadcast %3 : vector<1x128xf32> to vector<8x128xf32>
    %6 = arith.addf %4, %5 : vector<8x128xf32>
    %c0_5 = arith.constant 0 : index
    %7 = memref.load %arg1[%c0_5] : memref<2xf32, #tpu.memory_space<smem>>
    %cst_6 = arith.constant 0.000000e+00 : f32
    %8 = vector.broadcast %cst_6 : f32 to vector<8x128xf32>
    %9 = arith.cmpf oge, %6, %8 : vector<8x128xf32>
    %10 = vector.broadcast %7 : f32 to vector<8x128xf32>
    %11 = arith.mulf %10, %6 : vector<8x128xf32>
    %12 = arith.select %9, %6, %11 : vector<8x128xi1>, vector<8x128xf32>
    %c0_7 = arith.constant 0 : index
    %c0_8 = arith.constant 0 : index
    %13 = vector.load %arg5[%c0_7, %c0_8] : memref<128x128xbf16, #tpu.memory_space<vmem>>, vector<128x128xbf16>
    %14 = arith.extf %13 : vector<128x128xbf16> to vector<128x128xf32>
    %c0_9 = arith.constant 0 : index
    %c0_10 = arith.constant 0 : index
    %15 = vector.load %arg6[%c0_9, %c0_10] : memref<1x128xf32, #tpu.memory_space<vmem>>, vector<1x128xf32>
    %cst_11 = arith.constant dense<0.000000e+00> : vector<8x128xf32>
    %16 = tpu.matmul %12, %14, %cst_11 {dimension_numbers = #tpu.dot_dimension_numbers<[1], [0], [0], [1], [0, 0, 1, 1], [], []>} : vector<8x128xf32>, vector<128x128xf32>, vector<8x128xf32> -> vector<8x128xf32>
    %17 = vector.broadcast %15 : vector<1x128xf32> to vector<8x128xf32>
    %18 = arith.addf %16, %17 : vector<8x128xf32>
    %c1 = arith.constant 1 : index
    %19 = memref.load %arg1[%c1] : memref<2xf32, #tpu.memory_space<smem>>
    %cst_12 = arith.constant 0.000000e+00 : f32
    %20 = vector.broadcast %cst_12 : f32 to vector<8x128xf32>
    %21 = arith.cmpf oge, %18, %20 : vector<8x128xf32>
    %22 = vector.broadcast %19 : f32 to vector<8x128xf32>
    %23 = arith.mulf %22, %18 : vector<8x128xf32>
    %24 = arith.select %21, %18, %23 : vector<8x128xi1>, vector<8x128xf32>
    %c0_13 = arith.constant 0 : index
    %c0_14 = arith.constant 0 : index
    %25 = vector.load %arg7[%c0_13, %c0_14] : memref<128x128xbf16, #tpu.memory_space<vmem>>, vector<128x128xbf16>
    %26 = arith.extf %25 : vector<128x128xbf16> to vector<128x128xf32>
    %c0_15 = arith.constant 0 : index
    %c0_16 = arith.constant 0 : index
    %27 = vector.load %arg8[%c0_15, %c0_16] : memref<1x128xf32, #tpu.memory_space<vmem>>, vector<1x128xf32>
    %cst_17 = arith.constant dense<0.000000e+00> : vector<8x128xf32>
    %28 = tpu.matmul %24, %26, %cst_17 {dimension_numbers = #tpu.dot_dimension_numbers<[1], [0], [0], [1], [0, 0, 1, 1], [], []>} : vector<8x128xf32>, vector<128x128xf32>, vector<8x128xf32> -> vector<8x128xf32>
    %29 = vector.broadcast %27 : vector<1x128xf32> to vector<8x128xf32>
    %30 = arith.addf %28, %29 : vector<8x128xf32>
    %c0_18 = arith.constant 0 : index
    %c0_19 = arith.constant 0 : index
    %31 = vector.load %arg9[%c0_18, %c0_19] : memref<8x128xf32, #tpu.memory_space<vmem>>, vector<8x128xf32>
    tpu.vector_store %arg9[%c0_18, %c0_19], %30 {strides = array<i32>} : memref<8x128xf32, #tpu.memory_space<vmem>>, vector<8x128xf32>,
    return
  }
  func.func @transform_0(%arg0: i32) -> i32 {
    %c0_i32 = arith.constant 0 : i32
    %c0_i32_0 = arith.constant 0 : i32
    return %c0_i32 : i32
  }
  func.func @transform_1(%arg0: i32) -> (i32, i32) {
    %c0_i32 = arith.constant 0 : i32
    %c0_i32_0 = arith.constant 0 : i32
    return %arg0, %c0_i32 : i32, i32
  }
  func.func @transform_2(%arg0: i32) -> (i32, i32) {
    %c0_i32 = arith.constant 0 : i32
    %c0_i32_0 = arith.constant 0 : i32
    %c0_i32_1 = arith.constant 0 : i32
    return %c0_i32, %c0_i32_0 : i32, i32
  }
  func.func @transform_3(%arg0: i32) -> (i32, i32) {
    %c0_i32 = arith.constant 0 : i32
    %c0_i32_0 = arith.constant 0 : i32
    %c0_i32_1 = arith.constant 0 : i32
    return %c0_i32, %c0_i32_0 : i32, i32
  }
  func.func @transform_4(%arg0: i32) -> (i32, i32) {
    %c0_i32 = arith.constant 0 : i32
    %c0_i32_0 = arith.constant 0 : i32
    %c0_i32_1 = arith.constant 0 : i32
    return %c0_i32, %c0_i32_0 : i32, i32
  }
  func.func @transform_5(%arg0: i32) -> (i32, i32) {
    %c0_i32 = arith.constant 0 : i32
    %c0_i32_0 = arith.constant 0 : i32
    %c0_i32_1 = arith.constant 0 : i32
    return %c0_i32, %c0_i32_0 : i32, i32
  }
  func.func @transform_6(%arg0: i32) -> (i32, i32) {
    %c0_i32 = arith.constant 0 : i32
    %c0_i32_0 = arith.constant 0 : i32
    %c0_i32_1 = arith.constant 0 : i32
    return %c0_i32, %c0_i32_0 : i32, i32
  }
  func.func @transform_7(%arg0: i32) -> (i32, i32) {
    %c0_i32 = arith.constant 0 : i32
    %c0_i32_0 = arith.constant 0 : i32
    %c0_i32_1 = arith.constant 0 : i32
    return %c0_i32, %c0_i32_0 : i32, i32
  }
  func.func @transform_8(%arg0: i32) -> (i32, i32) {
    %c0_i32 = arith.constant 0 : i32
    %c0_i32_0 = arith.constant 0 : i32
    return %arg0, %c0_i32 : i32, i32
  }
}

</mosaic_0001>

<bundles_post_ra>
// kernel: tpu_custom_call.1
= control target key start
LH: loop header
LB: loop body
LE: loop exit
PB: predicated region body
PF: predicated region fallthrough
CT: control target
= control target key end

     0   :  { %13 = vsyncpa [#allocation5], 0  ;;  %s1001_s0 = inlined_call_operand.hbm [shape: f32[2], index: 0, kind: input, shape index: {}]   ;;  %s1002_s1 = inlined_call_operand.hbm [shape: f32[8,128], index: 1, kind: input, shape index: {}]   ;;  %s1003_s2 = inlined_call_operand.hbm [shape: bf16[128,128], index: 2, kind: input, shape index: {}]   ;;  %s1004_s3 = inlined_call_operand.vmem [shape: f32[1,128], index: 3, kind: input, shape index: {}]   ;;  %s1005_s4 = inlined_call_operand.hbm [shape: bf16[128,128], index: 4, kind: input, shape index: {}]   ;;  %s1006_s5 = inlined_call_operand.vmem [shape: f32[1,128], index: 5, kind: input, shape index: {}]   ;;  %s1007_s6 = inlined_call_operand.hbm [shape: bf16[128,128], index: 6, kind: input, shape index: {}]   ;;  %s1008_s7 = inlined_call_operand.vmem [shape: f32[1,128], index: 7, kind: input, shape index: {}]   ;;  %s1009_s8 = inlined_call_operand.hbm [shape: f32[8,128], index: 8, kind: output, shape index: {}]  }
   0x1   :  { %14 = vsyncpa [#allocation3], 0 }
   0x2   :  { %15 = vsyncpa [#allocation8], 0 }
   0x3   :  { %16 = vsyncpa [#allocation11], 0 }
   0x4   :  { %17 = vsyncpa [#allocation4], 0  ;;  %s856_s27 = smov [#allocation7]  }
   0x5   :  { %s41_s28 = sshll.u32 %s856_s27, 4  ;;  %s42_s28 = int_to_ptr.vmem [resolvable:$true] %s41_s28 }
   0x6   :  { %s746_s29 = scalar_lea.vmem %s42_s28, 1024  ;;  %p751_p1 = scmp.lt.s32.totalorder %s42_s28, %s42_s28 }
   0x7   :  { %p747_p0 = scmp.ne.s32.totalorder %s42_s28, %s746_s29  ;;  %p752_p2 = scmp.lt.s32.totalorder %s746_s29, %s746_s29 }
   0x9   :  { %p753_p3 = por %p752_p2, %p751_p1 }
   0xb   :  { %p754_p4 = pnand %p753_p3, %p747_p0 }
   0xd   :  { %757 = shalt.err (!%p754_p4)
}
   0xe   :  { %s857_s30 = smov 64   ;;  %s858_s9 = smov 4  }
   0xf   :  { %47 = dma.hbm_to_vmem [thread:$0]  %s1003_s2, 1024, %s42_s28, [#allocation8], %s857_s30, %s857_s30, %s858_s9  }
  0x10   :  { %s859_s12 = smov [#allocation2]   ;;  %s860_s15 = smov [#allocation6]  }
  0x11   :  { %25 = dma.hbm_to_smem %s1001_s0, 16, %s859_s12, [#allocation5]  }
  0x12   :  { %s32_s16 = sshll.u32 %s860_s15, 4  ;;  %s861_s17 = smov [#allocation9]   ;;  %s33_s16 = int_to_ptr.vmem [resolvable:$true] %s32_s16 }
  0x13   :  { %s55_s18 = sshll.u32 %s861_s17, 4  ;;  %s774_s19 = scalar_lea.vmem %s33_s16, 128  ;;  %s56_s18 = int_to_ptr.vmem [resolvable:$true] %s55_s18 }
  0x14   :  { %p775_p5 = scmp.ne.s32.totalorder %s33_s16, %s774_s19  ;;  %p779_p6 = scmp.lt.s32.totalorder %s33_s16, %s33_s16 }
  0x15   :  { %p780_p7 = scmp.lt.s32.totalorder %s774_s19, %s774_s19 }
  0x17   :  { %p781_p8 = por %p780_p7, %p779_p6 }
  0x19   :  { %p782_p9 = pnand %p781_p8, %p775_p5 }
  0x1b   :  { %785 = shalt.err (!%p782_p9)
}
  0x1c   :  { %35 = dma.hbm_to_vmem [thread:$0]  %s1002_s1, 128, %s33_s16, [#allocation3]  }
  0x1d   :  { %s794_s21 = scalar_lea.vmem %s56_s18, 1024  ;;  %p799_p11 = scmp.lt.s32.totalorder %s56_s18, %s56_s18 }
  0x1e   :  { %p795_p10 = scmp.ne.s32.totalorder %s56_s18, %s794_s21  ;;  %p800_p12 = scmp.lt.s32.totalorder %s794_s21, %s794_s21 }
  0x20   :  { %p801_p13 = por %p800_p12, %p799_p11 }
  0x22   :  { %p802_p0 = pnand %p801_p13, %p795_p10 }
  0x24   :  { %805 = shalt.err (!%p802_p0)
}
  0x25   :  { %61 = dma.hbm_to_vmem [thread:$0]  %s1005_s4, 1024, %s56_s18, [#allocation8], %s857_s30, %s857_s30, %s858_s9  }
  0x26   :  { %s862_s23 = smov [#allocation10]  }
  0x27   :  { %s69_s24 = sshll.u32 %s862_s23, 4  ;;  %s70_s24 = int_to_ptr.vmem [resolvable:$true] %s69_s24 }
  0x28   :  { %s814_s25 = scalar_lea.vmem %s70_s24, 1024  ;;  %p819_p2 = scmp.lt.s32.totalorder %s70_s24, %s70_s24 }
  0x29   :  { %p815_p1 = scmp.ne.s32.totalorder %s70_s24, %s814_s25  ;;  %p820_p3 = scmp.lt.s32.totalorder %s814_s25, %s814_s25 }
  0x2b   :  { %p821_p4 = por %p820_p3, %p819_p2 }
  0x2d   :  { %p822_p5 = pnand %p821_p4, %p815_p1 }
  0x2f   :  { %825 = shalt.err (!%p822_p5)
}
  0x30   :  { %75 = dma.hbm_to_vmem [thread:$0]  %s1007_s6, 1024, %s70_s24, [#allocation11], %s857_s30, %s857_s30, %s858_s9  }
  0x31   :  { %846 = dma.done.wait [#allocation5], 16  }
  0x32   :  { %847 = vsyncadd [#allocation5], 4294967280 }
  0x33   :  { %848 = dma.done.wait [#allocation3], 128  }
  0x34   :  { %849 = vsyncadd [#allocation3], 4294967168 }
  0x35   :  { %850 = dma.done.wait [#allocation8], 2048  }
  0x36   :  { %851 = vsyncadd [#allocation8], 4294965248 }
  0x37   :  { %852 = dma.done.wait [#allocation11], 1024  }
  0x38   :  { %853 = vsyncadd [#allocation11], 4294966272 }
  0x39   :  { %93 = sfence }
  0x3a   :  { %v557_v0 = vld [vmem:[#allocation7 + $0x38] sm:$0xff]   ;;  %v556_v1 = vld [vmem:[#allocation7 + $0x30] sm:$0xff]   ;;  %v863_v2 = vmov 0.0   ;;  %vm864_vm0 = vmmov 0   ;;  %v555_v7 = vld [vmem:[#allocation7 + $0x28] sm:$0xff]   ;;  %s204_s4 = sld [smem:[#allocation2]] }
  0x3b   :  { %623 = vmatprep.subr.mxu0 %v863_v2  ;;  %v485_v3 = vunpack.c.l.bf16 %v557_v0  ;;  %v486_v4 = vunpack.c.h.bf16 %v557_v0  ;;  %655 = vmatprep.mubr.msk.f32.mxu0 %vm864_vm0, %v863_v2  ;;  %v482_v5 = vunpack.c.h.bf16 %v556_v1  ;;  %v564_v6 = vld [vmem:[#allocation9 + $0x38] sm:$0xff]   ;;  %v563_v8 = vld [vmem:[#allocation9 + $0x30] sm:$0xff]   ;;  %v481_v9 = vunpack.c.l.bf16 %v556_v1  ;;  %v554_v14 = vld [vmem:[#allocation7 + $0x20] sm:$0xff]   ;;  %s865_s10 = smov [#allocation12]  }
  0x3c   :  { %658 = vmatprep.subr.mxu1 %v863_v2  ;;  %690 = vmatprep.mubr.msk.f32.mxu1 %vm864_vm0, %v863_v2  ;;  %v517_v10 = vunpack.c.l.bf16 %v564_v6  ;;  %v518_v11 = vunpack.c.h.bf16 %v564_v6  ;;  %v478_v12 = vunpack.c.h.bf16 %v555_v7  ;;  %v514_v13 = vunpack.c.h.bf16 %v563_v8  ;;  %v562_v15 = vld [vmem:[#allocation9 + $0x28] sm:$0xff]   ;;  %v553_v20 = vld [vmem:[#allocation7 + $0x18] sm:$0xff]   ;;  %v561_v21 = vld [vmem:[#allocation9 + $0x20] sm:$0xff]   ;;  %s439_s11 = sshll.u32 %s865_s10, 4  ;;  %s440_s11 = int_to_ptr.vmem [resolvable:$true] %s439_s11 }
  0x3d   :  { %624 = vmatpush3.msra.mxu0 %v486_v4  ;;  %v477_v16 = vunpack.c.l.bf16 %v555_v7  ;;  %v513_v17 = vunpack.c.l.bf16 %v563_v8  ;;  %v474_v18 = vunpack.c.h.bf16 %v554_v14  ;;  %v510_v19 = vunpack.c.h.bf16 %v562_v15  ;;  %v552_v26 = vld [vmem:[#allocation7 + $0x10] sm:$0xff]   ;;  %v560_v27 = vld [vmem:[#allocation9 + $0x18] sm:$0xff]   ;;  %v551_v32 = vld [vmem:[#allocation7 + $0x8] sm:$0xff]   ;;  %p831_p7 = scmp.lt.s32.totalorder %s440_s11, %s440_s11 }
  0x3e   :  { %625 = vmatprep.subr.mxu0 %v863_v2  ;;  %659 = vmatpush3.msra.mxu1 %v518_v11  ;;  %v473_v22 = vunpack.c.l.bf16 %v554_v14  ;;  %v509_v23 = vunpack.c.l.bf16 %v562_v15  ;;  %v470_v24 = vunpack.c.h.bf16 %v553_v20  ;;  %v506_v25 = vunpack.c.h.bf16 %v561_v21  ;;  %v559_v33 = vld [vmem:[#allocation9 + $0x10] sm:$0xff]   ;;  %v456_v38 = vld [vmem:[#allocation7] sm:$0xff]   ;;  %v558_v39 = vld [vmem:[#allocation9 + $0x8] sm:$0xff]  }
  0x3f   :  { %626 = vmatpush3.msra.mxu0 %v485_v3  ;;  %660 = vmatprep.subr.mxu1 %v863_v2  ;;  %v469_v28 = vunpack.c.l.bf16 %v553_v20  ;;  %v505_v29 = vunpack.c.l.bf16 %v561_v21  ;;  %v466_v30 = vunpack.c.h.bf16 %v552_v26  ;;  %v502_v31 = vunpack.c.h.bf16 %v560_v27  ;;  %v94_v45 = vld [vmem:[#allocation6] sm:$0xff]  ;;  %v488_v47 = vld [vmem:[#allocation9] sm:$0xff]   ;;  %v570_v51 = vld [vmem:[#allocation10 + $0x30] sm:$0xff]  }
  0x40   :  { %627 = vmatprep.subr.mxu0 %v863_v2  ;;  %661 = vmatpush3.msra.mxu1 %v517_v10  ;;  %v465_v34 = vunpack.c.l.bf16 %v552_v26  ;;  %v501_v35 = vunpack.c.l.bf16 %v560_v27  ;;  %v462_v36 = vunpack.c.h.bf16 %v551_v32  ;;  %v498_v37 = vunpack.c.h.bf16 %v559_v33  ;;  %v571_v50 = vld [vmem:[#allocation10 + $0x38] sm:$0xff]   ;;  %v569_v55 = vld [vmem:[#allocation10 + $0x28] sm:$0xff]   ;;  %v568_v58 = vld [vmem:[#allocation10 + $0x20] sm:$0xff]  }
  0x41   :  { %628 = vmatpush3.msra.mxu0 %v482_v5  ;;  %662 = vmatprep.subr.mxu1 %v863_v2  ;;  %v461_v40 = vunpack.c.l.bf16 %v551_v32  ;;  %v497_v41 = vunpack.c.l.bf16 %v559_v33  ;;  %v458_v42 = vunpack.c.h.bf16 %v456_v38  ;;  %v494_v43 = vunpack.c.h.bf16 %v558_v39  ;;  %v567_v61 = vld [vmem:[#allocation10 + $0x18] sm:$0xff]   ;;  %v566_v0 = vld [vmem:[#allocation10 + $0x10] sm:$0xff]   ;;  %v565_v4 = vld [vmem:[#allocation10 + $0x8] sm:$0xff]  }
  0x42   :  { %629 = vmatprep.subr.mxu0 %v863_v2  ;;  %663 = vmatpush3.msra.mxu1 %v514_v13  ;;  %v457_v44 = vunpack.c.l.bf16 %v456_v38  ;;  %v493_v46 = vunpack.c.l.bf16 %v558_v39  ;;  %v490_v48 = vunpack.c.h.bf16 %v488_v47  ;;  %v489_v49 = vunpack.c.l.bf16 %v488_v47  ;;  %v451_v7 = vld [vmem:[%s1004_s3] ss:$0 sm:$0xff]  ;;  %v520_v15 = vld [vmem:[#allocation10] sm:$0xff]   ;;  %s453_s3 = sld [smem:[#allocation2 + $0x1]] }
  0x43   :  { %630 = vmatpush3.msra.mxu0 %v481_v9  ;;  %664 = vmatprep.subr.mxu1 %v863_v2  ;;  %v550_v52 = vunpack.c.h.bf16 %v571_v50  ;;  %v549_v53 = vunpack.c.l.bf16 %v571_v50  ;;  %v546_v54 = vunpack.c.h.bf16 %v570_v51  ;;  %v545_v56 = vunpack.c.l.bf16 %v570_v51 }
  0x44   :  { %631 = vmatprep.subr.mxu0 %v863_v2  ;;  %665 = vmatpush3.msra.mxu1 %v513_v17  ;;  %v542_v57 = vunpack.c.h.bf16 %v569_v55  ;;  %v541_v59 = vunpack.c.l.bf16 %v569_v55  ;;  %v538_v60 = vunpack.c.h.bf16 %v568_v58  ;;  %v537_v62 = vunpack.c.l.bf16 %v568_v58 }
  0x45   :  { %632 = vmatpush3.msra.mxu0 %v478_v12  ;;  %666 = vmatprep.subr.mxu1 %v863_v2  ;;  %v534_v63 = vunpack.c.h.bf16 %v567_v61  ;;  %v533_v1 = vunpack.c.l.bf16 %v567_v61  ;;  %v530_v3 = vunpack.c.h.bf16 %v566_v0  ;;  %v529_v5 = vunpack.c.l.bf16 %v566_v0 }
  0x46   :  { %633 = vmatprep.subr.mxu0 %v863_v2  ;;  %667 = vmatpush3.msra.mxu1 %v510_v19  ;;  %v526_v6 = vunpack.c.h.bf16 %v565_v4  ;;  %v206_v9 = vstv %s204_s4  ;;  %v525_v14 = vunpack.c.l.bf16 %v565_v4  ;;  %v521_v17 = vunpack.c.l.bf16 %v520_v15 }
  0x47   :  { %634 = vmatpush3.msra.mxu0 %v477_v16  ;;  %668 = vmatprep.subr.mxu1 %v863_v2  ;;  %v522_v16 = vunpack.c.h.bf16 %v520_v15 }
  0x48   :  { %635 = vmatprep.subr.mxu0 %v863_v2  ;;  %669 = vmatpush3.msra.mxu1 %v509_v23  ;;  %v320_v20 = vstv %s453_s3 }
  0x49   :  { %636 = vmatpush3.msra.mxu0 %v474_v18  ;;  %670 = vmatprep.subr.mxu1 %v863_v2  ;;  %v452_v18 = vld [vmem:[%s1006_s5] ss:$0 sm:$0xff]  ;;  %s826_s5 = scalar_lea.vmem %s440_s11, 128 }
  0x4a   :  { %637 = vmatprep.subr.mxu0 %v863_v2  ;;  %671 = vmatpush3.msra.mxu1 %v506_v25  ;;  %v454_v25 = vld [vmem:[%s1008_s7] ss:$0 sm:$0xff]  ;;  %p827_p6 = scmp.ne.s32.totalorder %s440_s11, %s826_s5  ;;  %p832_p8 = scmp.lt.s32.totalorder %s826_s5, %s826_s5 }
  0x4b   :  { %638 = vmatpush3.msra.mxu0 %v473_v22  ;;  %672 = vmatprep.subr.mxu1 %v863_v2 }
  0x4c   :  { %639 = vmatprep.subr.mxu0 %v863_v2  ;;  %673 = vmatpush3.msra.mxu1 %v505_v29  ;;  %p833_p9 = por %p832_p8, %p831_p7 }
  0x4d   :  { %640 = vmatpush3.msra.mxu0 %v470_v24  ;;  %674 = vmatprep.subr.mxu1 %v863_v2 }
  0x4e   :  { %641 = vmatprep.subr.mxu0 %v863_v2  ;;  %675 = vmatpush3.msra.mxu1 %v502_v31  ;;  %p834_p10 = pnand %p833_p9, %p827_p6 }
  0x4f   :  { %642 = vmatpush3.msra.mxu0 %v469_v28  ;;  %676 = vmatprep.subr.mxu1 %v863_v2 }
  0x50   :  { %643 = vmatprep.subr.mxu0 %v863_v2  ;;  %677 = vmatpush3.msra.mxu1 %v501_v35 }
  0x51   :  { %644 = vmatpush3.msra.mxu0 %v466_v30  ;;  %678 = vmatprep.subr.mxu1 %v863_v2 }
  0x52   :  { %645 = vmatprep.subr.mxu0 %v863_v2  ;;  %679 = vmatpush3.msra.mxu1 %v498_v37 }
  0x53   :  { %646 = vmatpush3.msra.mxu0 %v465_v34  ;;  %680 = vmatprep.subr.mxu1 %v863_v2 }
  0x54   :  { %647 = vmatprep.subr.mxu0 %v863_v2  ;;  %681 = vmatpush3.msra.mxu1 %v497_v41 }
  0x55   :  { %648 = vmatpush3.msra.mxu0 %v462_v36  ;;  %682 = vmatprep.subr.mxu1 %v863_v2 }
  0x56   :  { %649 = vmatprep.subr.mxu0 %v863_v2  ;;  %683 = vmatpush3.msra.mxu1 %v494_v43 }
  0x57   :  { %650 = vmatpush3.msra.mxu0 %v461_v40  ;;  %684 = vmatprep.subr.mxu1 %v863_v2 }
  0x58   :  { %651 = vmatprep.subr.mxu0 %v863_v2  ;;  %685 = vmatpush3.msra.mxu1 %v493_v46 }
  0x59   :  { %652 = vmatpush3.msra.mxu0 %v458_v42  ;;  %686 = vmatprep.subr.mxu1 %v863_v2 }
  0x5a   :  { %653 = vmatprep.subr.mxu0 %v863_v2  ;;  %687 = vmatpush3.msra.mxu1 %v490_v48 }
  0x5b   :  { %654 = vmatpush3.msra.mxu0 %v457_v44  ;;  %688 = vmatprep.subr.mxu1 %v863_v2 }
  0x5c   :  { %656 = vmatmul.mubr.f32.vlgmr.msra.gmra.mxu0 %v94_v45  ;;  %693 = vmatprep.subr.mxu0 %v863_v2 }
  0x5d   :  { %725 = vmatprep.mubr.msk.f32.mxu0 %vm864_vm0, %v863_v2  ;;  %689 = vmatpush3.msra.mxu1 %v489_v49 }
  0x5e   :  { %694 = vmatpush3.msra.mxu0 %v550_v52 }
  0x5f   :  { %695 = vmatprep.subr.mxu0 %v863_v2 }
  0x60   :  { %696 = vmatpush3.msra.mxu0 %v549_v53 }
  0x61   :  { %697 = vmatprep.subr.mxu0 %v863_v2 }
  0x62   :  { %698 = vmatpush3.msra.mxu0 %v546_v54 }
  0x63   :  { %699 = vmatprep.subr.mxu0 %v863_v2 }
  0x64   :  { %700 = vmatpush3.msra.mxu0 %v545_v56 }
  0x65   :  { %701 = vmatprep.subr.mxu0 %v863_v2 }
  0x66   :  { %702 = vmatpush3.msra.mxu0 %v542_v57 }
  0x67   :  { %703 = vmatprep.subr.mxu0 %v863_v2 }
  0x68   :  { %704 = vmatpush3.msra.mxu0 %v541_v59 }
  0x69   :  { %705 = vmatprep.subr.mxu0 %v863_v2 }
  0x6a   :  { %706 = vmatpush3.msra.mxu0 %v538_v60 }
  0x6b   :  { %707 = vmatprep.subr.mxu0 %v863_v2 }
  0x6c   :  { %708 = vmatpush3.msra.mxu0 %v537_v62 }
  0x6d   :  { %709 = vmatprep.subr.mxu0 %v863_v2 }
  0x6e   :  { %710 = vmatpush3.msra.mxu0 %v534_v63 }
  0x6f   :  { %711 = vmatprep.subr.mxu0 %v863_v2 }
  0x70   :  { %712 = vmatpush3.msra.mxu0 %v533_v1 }
  0x71   :  { %713 = vmatprep.subr.mxu0 %v863_v2 }
  0x72   :  { %714 = vmatpush3.msra.mxu0 %v530_v3 }
  0x73   :  { %715 = vmatprep.subr.mxu0 %v863_v2 }
  0x74   :  { %716 = vmatpush3.msra.mxu0 %v529_v5 }
  0x75   :  { %717 = vmatprep.subr.mxu0 %v863_v2 }
  0x76   :  { %718 = vmatpush3.msra.mxu0 %v526_v6 }
  0x77   :  { %719 = vmatprep.subr.mxu0 %v863_v2 }
  0x78   :  { %720 = vmatpush3.msra.mxu0 %v525_v14 }
  0x79   :  { %721 = vmatprep.subr.mxu0 %v863_v2 }
  0x7a   :  { %722 = vmatpush3.msra.mxu0 %v522_v16 }
  0x7b   :  { %723 = vmatprep.subr.mxu0 %v863_v2 }
  0x7c   :  { %724 = vmatpush3.msra.mxu0 %v521_v17 }
 0x11c   :  { %v200_v8 = vpop.f32.mrf.mxu0 }
 0x11d   :  { %v201_v10 = vadd.f32 %v451_v7, %v200_v8 }
 0x11e   :  { %v657_v11 = vpop.f32.mrf.mxu0 }
 0x11f   :  { %v207_v12 = vmul.f32 %v206_v9, %v201_v10  ;;  %vm205_vm1 = vcmp.ge.f32.partialorder %v201_v10, 0.0 }
 0x121   :  { %v208_v13 = vsel %vm205_vm1, %v201_v10, %v207_v12 }
 0x122   :  { %691 = vmatmul.mubr.f32.vlgmr.msra.gmra.mxu1 %v208_v13 }
 0x1e2   :  { %v314_v19 = vpop.f32.mrf.mxu1 }
 0x1e3   :  { %v315_v21 = vadd.f32 %v452_v18, %v314_v19 }
 0x1e4   :  { %v692_v22 = vpop.f32.mrf.mxu1 }
 0x1e5   :  { %vm319_vm2 = vcmp.ge.f32.partialorder %v315_v21, 0.0  ;;  %v321_v23 = vmul.f32 %v320_v20, %v315_v21 }
 0x1e7   :  { %v322_v24 = vsel %vm319_vm2, %v315_v21, %v321_v23 }
 0x1e8   :  { %726 = vmatmul.mubr.f32.vlgmr.msra.gmra.mxu0 %v322_v24 }
 0x2a8   :  { %v428_v2 = vpop.f32.mrf.mxu0 }
 0x2a9   :  { %v429_v26 = vadd.f32 %v454_v25, %v428_v2 }
 0x2aa   :  { %v727_v27 = vpop.f32.mrf.mxu0 }
 0x2ab   :  { %432 = vst [vmem:[#allocation12] sm:$0xff] %v429_v26 }
 0x2ac   :  { %837 = shalt.err (!%p834_p10)
}
 0x2ad   :  { %442 = dma.vmem_to_hbm [thread:$0]  %s440_s11, 128, %s1009_s8, [#allocation4]  }
 0x2ae   :  { %854 = dma.done.wait [#allocation4], 128  }
 0x2af   :  { %855 = vsyncadd [#allocation4], 4294967168 }
 0x2b0   :  { %446 = vsyncpa [#allocation3], 1 }
 0x2b1   :  { %447 = vsyncpa [#allocation8], 1 }
 0x2b2   :  { %448 = vsyncpa [#allocation11], 1 }
 0x2b3   :  { %449 = vsyncpa [#allocation4], 1 }
 0x2b4   :  { %450 = vsyncpa [#allocation5], 1 }

</bundles_post_ra>
